<compile_context>
chip_gen: v6e
topology: v6e:2x2x1
jax: 0.10.0
libtpu: 0.0.40
codegen_flags: <defaults>
</compile_context>

<pallas_src>
import jax
import jax.numpy as jnp
from jax import lax
from jax.experimental import pallas as pl
from jax.experimental.pallas import tpu as pltpu

T_STEPS = 4            # 4 corners per sequence
HIDDEN_DIM = 2
LANE_CHUNK = 2048      # lanes processed per inner-loop iteration (mult. of 128)
BLOCK_B_MAX = 128 * 1024            # max lanes per grid step (mult. of LANE_CHUNK)
VMEM_LIMIT_BYTES = 32 * 1024 * 1024  # > v5e's 16 MiB scoped default, < v7x physical


def _round_up(n, m):
    return ((n + m - 1) // m) * m


def _choose_block_b(b):
    """Lane-block size: multiple of 128, VMEM-sized, and (for large B) a small
    EVEN number of grid steps so v7x's two TensorCores both get work."""
    if b <= 2 * LANE_CHUNK:
        # Tiny batches: a single chunk-or-smaller block; perf is irrelevant here.
        return min(_round_up(b, 128), LANE_CHUNK)
    n_steps = max(2, -(-b // BLOCK_B_MAX))
    if n_steps % 2:
        n_steps += 1
    return min(BLOCK_B_MAX, _round_up(-(-b // n_steps), LANE_CHUNK))


def rnn2_classifier_kernel(params_ref, x_ref, out_ref):
    # params_ref: SMEM f32[13] = [w_ih(4), w_hh(4), b_ih+b_hh(2), w_cls(2), b_cls(1)]
    # x_ref:      VMEM f32[2*T, block_b]  (row 2t = x_cord of step t, 2t+1 = y_cord)
    # out_ref:    VMEM f32[1, block_b]
    block_b = out_ref.shape[-1]
    chunk = min(LANE_CHUNK, block_b)
    n_chunks = block_b // chunk          # block_b is constructed to be a multiple

    # Read the 13 packed scalars once and splat each to a (1, chunk) vector
    # exactly once (hoisted out of the unrolled timestep chain and the chunk
    # loop; JAX does not CSE broadcast_in_dim).
    w00, w01, w10, w11 = (params_ref[i] for i in range(4))
    u00, u01, u10, u11 = (params_ref[i] for i in range(4, 8))
    b0, b1 = params_ref[8], params_ref[9]
    c0, c1, bc = params_ref[10], params_ref[11], params_ref[12]

    def splat(s):
        return jnp.full((1, chunk), s, dtype=jnp.float32)

    w00v, w01v, w10v, w11v = splat(w00), splat(w01), splat(w10), splat(w11)
    u00v, u01v, u10v, u11v = splat(u00), splat(u01), splat(u10), splat(u11)
    b0v, b1v = splat(b0), splat(b1)
    c0v, c1v, bcv = splat(c0), splat(c1), splat(bc)

    def process(off):
        # One lane chunk: everything below stays in vregs (no whole-block
        # VMEM temporaries), so VALU/EUP remain the binding units.
        lanes = pl.ds(off, chunk)
        xc = x_ref[0:1, lanes]
        yc = x_ref[1:2, lanes]
        # t = 0: hidden state starts at zero, so the recurrent terms vanish
        # (but the folded bias b_ih + b_hh is still applied, as in torch).
        h0 = jnp.tanh(xc * w00v + yc * w01v + b0v)
        h1 = jnp.tanh(xc * w10v + yc * w11v + b1v)
        # Remaining steps: broadcast FMAs on the VPU, tanh on the EUP.
        for t in range(1, T_STEPS):
            xc = x_ref[2 * t:2 * t + 1, lanes]
            yc = x_ref[2 * t + 1:2 * t + 2, lanes]
            p0 = xc * w00v + yc * w01v + h0 * u00v + h1 * u01v + b0v
            p1 = xc * w10v + yc * w11v + h0 * u10v + h1 * u11v + b1v
            h0 = jnp.tanh(p0)
            h1 = jnp.tanh(p1)
        # Linear classifier -> lane-dense store.
        out_ref[:, lanes] = h0 * c0v + h1 * c1v + bcv

    if n_chunks == 1:
        process(0)
    else:
        def chunk_body(i, carry):
            process(pl.multiple_of(i * chunk, chunk))
            return carry
        lax.fori_loop(0, n_chunks, chunk_body, 0)


def _pack_params(w_ih, b_ih, w_hh, b_hh, w_cls, b_cls):
    # Fold b_ih + b_hh on the host; pack everything into one SMEM scalar array.
    return jnp.concatenate([
        w_ih.reshape(-1).astype(jnp.float32),            # 0..3
        w_hh.reshape(-1).astype(jnp.float32),            # 4..7
        (b_ih + b_hh).reshape(-1).astype(jnp.float32),   # 8..9
        w_cls.reshape(-1).astype(jnp.float32),           # 10..11
        b_cls.reshape(-1).astype(jnp.float32),           # 12
    ])


def rnn2_forward_time_major(x_tm, params):
    """x_tm: (2*T_STEPS, B) float32 time-major slab -> (B,) float32 logits."""
    assert x_tm.shape[0] == 2 * T_STEPS
    B = x_tm.shape[1]
    block_b = _choose_block_b(B)
    n_blocks = pl.cdiv(B, block_b)
    padded = n_blocks * block_b          # output kept lane-dense & unmasked

    out = pl.pallas_call(
        rnn2_classifier_kernel,
        out_shape=jax.ShapeDtypeStruct((1, padded), jnp.float32),
        grid=(n_blocks,),
        in_specs=[
            pl.BlockSpec(memory_space=pltpu.MemorySpace.SMEM),       # params (whole)
            pl.BlockSpec((2 * T_STEPS, block_b), lambda i: (0, i)),  # x slab block
        ],
        out_specs=pl.BlockSpec((1, block_b), lambda i: (0, i)),
        compiler_params=pltpu.CompilerParams(
            dimension_semantics=("parallel",),
            vmem_limit_bytes=VMEM_LIMIT_BYTES,
        ),
    )(params, x_tm)

    # Tail lanes of the last (partial) block are garbage; slice them off.
    return out[0, :B]


def rnn2_classifier(x, w_ih, b_ih, w_hh, b_hh, w_cls, b_cls):
    """x: (B, T_STEPS, 2) float32 -> (B,) float32 logits (one per sequence)."""
    B = x.shape[0]
    params = _pack_params(w_ih, b_ih, w_hh, b_hh, w_cls, b_cls)
    # Single fused relayout pass: (B, T, 2) -> (2T, B).  No jnp.pad anymore.
    # Producers that already hold the time-major slab should call
    # rnn2_forward_time_major directly and skip this HBM pass entirely.
    x_tm = x.reshape(B, 2 * T_STEPS).T.astype(jnp.float32)
    return rnn2_forward_time_major(x_tm, params)


def reference_forward(x, w_ih, b_ih, w_hh, b_hh, w_cls, b_cls):
    # Pure-JAX reference mirroring the torch loop (f32). Returns (B,) logits.
    B = x.shape[0]
    hidden = jnp.zeros((B, HIDDEN_DIM), dtype=jnp.float32)
    for t in range(T_STEPS):
        hidden = jnp.tanh(x[:, t, :] @ w_ih.T + b_ih + hidden @ w_hh.T + b_hh)
    return (hidden @ w_cls.T + b_cls)[:, 0]


if __name__ == "__main__":
    # Deterministic parameters — exactly the values hard-coded in the module.
    w_ih = jnp.array([[0.3519, -0.6514], [0.3238, 0.5568]], dtype=jnp.float32)
    b_ih = jnp.array([0.2198, 0.4712], dtype=jnp.float32)
    w_hh = jnp.array([[0.4279, 0.6832], [-0.4114, 0.5715]], dtype=jnp.float32)
    b_hh = jnp.array([-0.409, -0.1299], dtype=jnp.float32)
    w_cls = jnp.array([[-0.2732, -0.1587]], dtype=jnp.float32)
    b_cls = jnp.array([0.5806], dtype=jnp.float32)

    key = jax.random.PRNGKey(0)

    # Case 1: tiny batch (single ragged block, single chunk).
    B_small = 8
    x_small = jax.random.normal(key, (B_small, T_STEPS, 2), dtype=jnp.float32)
    out_small = jax.block_until_ready(
        rnn2_classifier(x_small, w_ih, b_ih, w_hh, b_hh, w_cls, b_cls))
    ref_small = reference_forward(x_small, w_ih, b_ih, w_hh, b_hh, w_cls, b_cls)
    assert out_small.shape == (B_small,)
    assert jnp.allclose(out_small, ref_small, atol=2e-5, rtol=1e-5)

    # Case 2: batch exercising multiple grid steps, the inner chunk loop and a
    # ragged (garbage-tail) last block.
    B_big = 5000
    x_big = jax.random.normal(jax.random.PRNGKey(0), (B_big, T_STEPS, 2),
                              dtype=jnp.float32)
    out_big = jax.block_until_ready(
        rnn2_classifier(x_big, w_ih, b_ih, w_hh, b_hh, w_cls, b_cls))
    ref_big = reference_forward(x_big, w_ih, b_ih, w_hh, b_hh, w_cls, b_cls)
    assert out_big.shape == (B_big,)
    assert jnp.allclose(out_big, ref_big, atol=2e-5, rtol=1e-5)

    print("KERNEL_OK")
</pallas_src>

<mosaic_0001>
module attributes {stable_mosaic.version = 11 : i64} {
  func.func @rnn2_classifier_kernel(%arg0: i32, %arg1: memref<13xf32, #tpu.memory_space<smem>>, %arg2: memref<8x128xf32, #tpu.memory_space<vmem>>, %arg3: memref<1x128xf32, #tpu.memory_space<vmem>>) attributes {dimension_semantics = [#tpu.dimension_semantics<parallel>], iteration_bounds = array<i64: 1>, scalar_prefetch = 0 : i64, scratch_operands = 0 : i64, tpu.core_type = #tpu.core_type<tc>, window_params = [{transform_indices = @transform_0, window_bounds = array<i64: 13>}, {transform_indices = @transform_1, window_bounds = array<i64: 8, 128>}, {transform_indices = @transform_2, window_bounds = array<i64: 1, 128>}]} {
    %c0 = arith.constant 0 : index
    %0 = memref.load %arg1[%c0] : memref<13xf32, #tpu.memory_space<smem>>
    %c1 = arith.constant 1 : index
    %1 = memref.load %arg1[%c1] : memref<13xf32, #tpu.memory_space<smem>>
    %c2 = arith.constant 2 : index
    %2 = memref.load %arg1[%c2] : memref<13xf32, #tpu.memory_space<smem>>
    %c3 = arith.constant 3 : index
    %3 = memref.load %arg1[%c3] : memref<13xf32, #tpu.memory_space<smem>>
    %c4 = arith.constant 4 : index
    %4 = memref.load %arg1[%c4] : memref<13xf32, #tpu.memory_space<smem>>
    %c5 = arith.constant 5 : index
    %5 = memref.load %arg1[%c5] : memref<13xf32, #tpu.memory_space<smem>>
    %c6 = arith.constant 6 : index
    %6 = memref.load %arg1[%c6] : memref<13xf32, #tpu.memory_space<smem>>
    %c7 = arith.constant 7 : index
    %7 = memref.load %arg1[%c7] : memref<13xf32, #tpu.memory_space<smem>>
    %c8 = arith.constant 8 : index
    %8 = memref.load %arg1[%c8] : memref<13xf32, #tpu.memory_space<smem>>
    %c9 = arith.constant 9 : index
    %9 = memref.load %arg1[%c9] : memref<13xf32, #tpu.memory_space<smem>>
    %c10 = arith.constant 10 : index
    %10 = memref.load %arg1[%c10] : memref<13xf32, #tpu.memory_space<smem>>
    %c11 = arith.constant 11 : index
    %11 = memref.load %arg1[%c11] : memref<13xf32, #tpu.memory_space<smem>>
    %c12 = arith.constant 12 : index
    %12 = memref.load %arg1[%c12] : memref<13xf32, #tpu.memory_space<smem>>
    %13 = vector.broadcast %0 : f32 to vector<1x128xf32>
    %14 = vector.broadcast %1 : f32 to vector<1x128xf32>
    %15 = vector.broadcast %2 : f32 to vector<1x128xf32>
    %16 = vector.broadcast %3 : f32 to vector<1x128xf32>
    %17 = vector.broadcast %4 : f32 to vector<1x128xf32>
    %18 = vector.broadcast %5 : f32 to vector<1x128xf32>
    %19 = vector.broadcast %6 : f32 to vector<1x128xf32>
    %20 = vector.broadcast %7 : f32 to vector<1x128xf32>
    %21 = vector.broadcast %8 : f32 to vector<1x128xf32>
    %22 = vector.broadcast %9 : f32 to vector<1x128xf32>
    %23 = vector.broadcast %10 : f32 to vector<1x128xf32>
    %24 = vector.broadcast %11 : f32 to vector<1x128xf32>
    %25 = vector.broadcast %12 : f32 to vector<1x128xf32>
    %c0_0 = arith.constant 0 : index
    %c0_1 = arith.constant 0 : index
    %26 = vector.load %arg2[%c0_0, %c0_1] : memref<8x128xf32, #tpu.memory_space<vmem>>, vector<1x128xf32>
    %c1_2 = arith.constant 1 : index
    %c0_3 = arith.constant 0 : index
    %27 = vector.load %arg2[%c1_2, %c0_3] : memref<8x128xf32, #tpu.memory_space<vmem>>, vector<1x128xf32>
    %28 = arith.mulf %26, %13 : vector<1x128xf32>
    %29 = arith.mulf %27, %14 : vector<1x128xf32>
    %30 = arith.addf %28, %29 : vector<1x128xf32>
    %31 = arith.addf %30, %21 : vector<1x128xf32>
    %32 = math.tanh %31 : vector<1x128xf32>
    %33 = arith.mulf %26, %15 : vector<1x128xf32>
    %34 = arith.mulf %27, %16 : vector<1x128xf32>
    %35 = arith.addf %33, %34 : vector<1x128xf32>
    %36 = arith.addf %35, %22 : vector<1x128xf32>
    %37 = math.tanh %36 : vector<1x128xf32>
    %c2_4 = arith.constant 2 : index
    %c0_5 = arith.constant 0 : index
    %38 = vector.load %arg2[%c2_4, %c0_5] : memref<8x128xf32, #tpu.memory_space<vmem>>, vector<1x128xf32>
    %c3_6 = arith.constant 3 : index
    %c0_7 = arith.constant 0 : index
    %39 = vector.load %arg2[%c3_6, %c0_7] : memref<8x128xf32, #tpu.memory_space<vmem>>, vector<1x128xf32>
    %40 = arith.mulf %38, %13 : vector<1x128xf32>
    %41 = arith.mulf %39, %14 : vector<1x128xf32>
    %42 = arith.addf %40, %41 : vector<1x128xf32>
    %43 = arith.mulf %32, %17 : vector<1x128xf32>
    %44 = arith.addf %42, %43 : vector<1x128xf32>
    %45 = arith.mulf %37, %18 : vector<1x128xf32>
    %46 = arith.addf %44, %45 : vector<1x128xf32>
    %47 = arith.addf %46, %21 : vector<1x128xf32>
    %48 = arith.mulf %38, %15 : vector<1x128xf32>
    %49 = arith.mulf %39, %16 : vector<1x128xf32>
    %50 = arith.addf %48, %49 : vector<1x128xf32>
    %51 = arith.mulf %32, %19 : vector<1x128xf32>
    %52 = arith.addf %50, %51 : vector<1x128xf32>
    %53 = arith.mulf %37, %20 : vector<1x128xf32>
    %54 = arith.addf %52, %53 : vector<1x128xf32>
    %55 = arith.addf %54, %22 : vector<1x128xf32>
    %56 = math.tanh %47 : vector<1x128xf32>
    %57 = math.tanh %55 : vector<1x128xf32>
    %c4_8 = arith.constant 4 : index
    %c0_9 = arith.constant 0 : index
    %58 = vector.load %arg2[%c4_8, %c0_9] : memref<8x128xf32, #tpu.memory_space<vmem>>, vector<1x128xf32>
    %c5_10 = arith.constant 5 : index
    %c0_11 = arith.constant 0 : index
    %59 = vector.load %arg2[%c5_10, %c0_11] : memref<8x128xf32, #tpu.memory_space<vmem>>, vector<1x128xf32>
    %60 = arith.mulf %58, %13 : vector<1x128xf32>
    %61 = arith.mulf %59, %14 : vector<1x128xf32>
    %62 = arith.addf %60, %61 : vector<1x128xf32>
    %63 = arith.mulf %56, %17 : vector<1x128xf32>
    %64 = arith.addf %62, %63 : vector<1x128xf32>
    %65 = arith.mulf %57, %18 : vector<1x128xf32>
    %66 = arith.addf %64, %65 : vector<1x128xf32>
    %67 = arith.addf %66, %21 : vector<1x128xf32>
    %68 = arith.mulf %58, %15 : vector<1x128xf32>
    %69 = arith.mulf %59, %16 : vector<1x128xf32>
    %70 = arith.addf %68, %69 : vector<1x128xf32>
    %71 = arith.mulf %56, %19 : vector<1x128xf32>
    %72 = arith.addf %70, %71 : vector<1x128xf32>
    %73 = arith.mulf %57, %20 : vector<1x128xf32>
    %74 = arith.addf %72, %73 : vector<1x128xf32>
    %75 = arith.addf %74, %22 : vector<1x128xf32>
    %76 = math.tanh %67 : vector<1x128xf32>
    %77 = math.tanh %75 : vector<1x128xf32>
    %c6_12 = arith.constant 6 : index
    %c0_13 = arith.constant 0 : index
    %78 = vector.load %arg2[%c6_12, %c0_13] : memref<8x128xf32, #tpu.memory_space<vmem>>, vector<1x128xf32>
    %c7_14 = arith.constant 7 : index
    %c0_15 = arith.constant 0 : index
    %79 = vector.load %arg2[%c7_14, %c0_15] : memref<8x128xf32, #tpu.memory_space<vmem>>, vector<1x128xf32>
    %80 = arith.mulf %78, %13 : vector<1x128xf32>
    %81 = arith.mulf %79, %14 : vector<1x128xf32>
    %82 = arith.addf %80, %81 : vector<1x128xf32>
    %83 = arith.mulf %76, %17 : vector<1x128xf32>
    %84 = arith.addf %82, %83 : vector<1x128xf32>
    %85 = arith.mulf %77, %18 : vector<1x128xf32>
    %86 = arith.addf %84, %85 : vector<1x128xf32>
    %87 = arith.addf %86, %21 : vector<1x128xf32>
    %88 = arith.mulf %78, %15 : vector<1x128xf32>
    %89 = arith.mulf %79, %16 : vector<1x128xf32>
    %90 = arith.addf %88, %89 : vector<1x128xf32>
    %91 = arith.mulf %76, %19 : vector<1x128xf32>
    %92 = arith.addf %90, %91 : vector<1x128xf32>
    %93 = arith.mulf %77, %20 : vector<1x128xf32>
    %94 = arith.addf %92, %93 : vector<1x128xf32>
    %95 = arith.addf %94, %22 : vector<1x128xf32>
    %96 = math.tanh %87 : vector<1x128xf32>
    %97 = math.tanh %95 : vector<1x128xf32>
    %98 = arith.mulf %96, %23 : vector<1x128xf32>
    %99 = arith.mulf %97, %24 : vector<1x128xf32>
    %100 = arith.addf %98, %99 : vector<1x128xf32>
    %101 = arith.addf %100, %25 : vector<1x128xf32>
    %c0_16 = arith.constant 0 : index
    %c0_17 = arith.constant 0 : index
    %102 = vector.load %arg3[%c0_16, %c0_17] : memref<1x128xf32, #tpu.memory_space<vmem>>, vector<1x128xf32>
    tpu.vector_store %arg3[%c0_16, %c0_17], %101 {strides = array<i32>} : memref<1x128xf32, #tpu.memory_space<vmem>>, vector<1x128xf32>,
    return
  }
  func.func @transform_0(%arg0: i32) -> i32 {
    %c0_i32 = arith.constant 0 : i32
    %c0_i32_0 = arith.constant 0 : i32
    return %c0_i32 : i32
  }
  func.func @transform_1(%arg0: i32) -> (i32, i32) {
    %c0_i32 = arith.constant 0 : i32
    %c0_i32_0 = arith.constant 0 : i32
    return %c0_i32, %arg0 : i32, i32
  }
  func.func @transform_2(%arg0: i32) -> (i32, i32) {
    %c0_i32 = arith.constant 0 : i32
    %c0_i32_0 = arith.constant 0 : i32
    return %c0_i32, %arg0 : i32, i32
  }
}

</mosaic_0001>

<bundles_post_ra>
// kernel: tpu_custom_call.1
= control target key start
LH: loop header
LB: loop body
LE: loop exit
PB: predicated region body
PF: predicated region fallthrough
CT: control target
= control target key end

     0   :  { %7 = vsyncpa [#allocation5], 0  ;;  %s302_s0 = inlined_call_operand.hbm [shape: f32[13], index: 0, kind: input, shape index: {}]   ;;  %s303_s1 = inlined_call_operand.hbm [shape: f32[8,8], index: 1, kind: input, shape index: {}]   ;;  %s304_s2 = inlined_call_operand.hbm [shape: f32[1,128], index: 2, kind: output, shape index: {}]  }
   0x1   :  { %8 = vsyncpa [#allocation3], 0 }
   0x2   :  { %9 = vsyncpa [#allocation4], 0  ;;  %s239_s9 = smov [#allocation2]   ;;  %s240_s12 = smov [#allocation6]  }
   0x3   :  { %17 = dma.hbm_to_smem %s302_s0, 16, %s239_s9, [#allocation5]  }
   0x4   :  { %s24_s13 = sshll.u32 %s240_s12, 4  ;;  %s25_s13 = int_to_ptr.vmem [resolvable:$true] %s24_s13 }
   0x5   :  { %s201_s14 = scalar_lea.vmem %s25_s13, 128  ;;  %p206_p1 = scmp.lt.s32.totalorder %s25_s13, %s25_s13 }
   0x6   :  { %p202_p0 = scmp.ne.s32.totalorder %s25_s13, %s201_s14  ;;  %p207_p2 = scmp.lt.s32.totalorder %s201_s14, %s201_s14 }
   0x8   :  { %p208_p3 = por %p207_p2, %p206_p1 }
   0xa   :  { %p209_p4 = pnand %p208_p3, %p202_p0 }
   0xc   :  { %212 = shalt.err (!%p209_p4)
}
   0xd   :  { %27 = dma.hbm_to_vmem [thread:$0]  %s303_s1, 128, %s25_s13, [#allocation3]  }
   0xe   :  { %233 = dma.done.wait [#allocation5], 16  }
   0xf   :  { %234 = vsyncadd [#allocation5], 4294967280 }
  0x10   :  { %235 = dma.done.wait [#allocation3], 128  }
  0x11   :  { %236 = vsyncadd [#allocation3], 4294967168 }
  0x12   :  { %34 = sfence }
  0x13   :  { %s35_s0 = sld [smem:[#allocation2]]  ;;  %v61_v0 = vld [vmem:[#allocation6] sm:$0x1]  ;;  %v62_v1 = vld [vmem:[#allocation6 + $0x1] sm:$0x1]  ;;  %s241_s28 = smov [#allocation7]  }
  0x14   :  { %s154_s17 = sld [smem:[#allocation2 + $0x1]]  ;;  %v73_v16 = vld [vmem:[#allocation6 + $0x2] sm:$0x1]  ;;  %v74_v17 = vld [vmem:[#allocation6 + $0x3] sm:$0x1]  ;;  %s144_s29 = sshll.u32 %s241_s28, 4  ;;  %s145_s29 = int_to_ptr.vmem [resolvable:$true] %s144_s29 }
  0x15   :  { %s155_s18 = sld [smem:[#allocation2 + $0x2]]  ;;  %v93_v40 = vld [vmem:[#allocation6 + $0x4] sm:$0x1]  ;;  %v94_v41 = vld [vmem:[#allocation6 + $0x5] sm:$0x1]  ;;  %s213_s30 = scalar_lea.vmem %s145_s29, 16 }
  0x16   :  { %s156_s19 = sld [smem:[#allocation2 + $0x3]]  ;;  %v113_v60 = vld [vmem:[#allocation6 + $0x6] sm:$0x1]  ;;  %v114_v61 = vld [vmem:[#allocation6 + $0x7] sm:$0x1]  ;;  %p214_p5 = scmp.ne.s32.totalorder %s145_s29, %s213_s30 }
  0x17   :  { %s161_s20 = sld [smem:[#allocation2 + $0x8]]  ;;  %s217_s3 = scalar_lea.vmem %s145_s29, 32 }
  0x18   :  { %s162_s1 = sld [smem:[#allocation2 + $0x9]]  ;;  %p218_p6 = scmp.lt.s32.totalorder %s145_s29, %s145_s29 }
  0x19   :  { %v263_v2 = vstv %s35_s0  ;;  %s157_s21 = sld [smem:[#allocation2 + $0x4]]  ;;  %p219_p7 = scmp.lt.s32.totalorder %s217_s3, %s213_s30 }
  0x1a   :  { %v265_v3 = vstv %s154_s17  ;;  %v63_v4 = vmul.f32 %v61_v0, %v263_v2  ;;  %s158_s22 = sld [smem:[#allocation2 + $0x5]]  ;;  %v75_v18 = vmul.f32 %v73_v16, %v263_v2  ;;  %v95_v42 = vmul.f32 %v93_v40, %v263_v2 }
  0x1b   :  { %v268_v5 = vstv %s155_s18  ;;  %v64_v6 = vmul.f32 %v62_v1, %v265_v3  ;;  %s159_s23 = sld [smem:[#allocation2 + $0x6]]  ;;  %v76_v19 = vmul.f32 %v74_v17, %v265_v3  ;;  %v96_v43 = vmul.f32 %v94_v41, %v265_v3  ;;  %p220_p8 = por %p219_p7, %p218_p6 }
  0x1c   :  { %v271_v7 = vstv %s156_s19  ;;  %v68_v8 = vmul.f32 %v61_v0, %v268_v5  ;;  %s160_s24 = sld [smem:[#allocation2 + $0x7]]  ;;  %v83_v20 = vmul.f32 %v73_v16, %v268_v5  ;;  %v103_v44 = vmul.f32 %v93_v40, %v268_v5 }
  0x1d   :  { %v69_v9 = vmul.f32 %v62_v1, %v271_v7  ;;  %v65_v10 = vadd.f32 %v64_v6, %v63_v4  ;;  %v275_v12 = vstv %s161_s20  ;;  %v84_v21 = vmul.f32 %v74_v17, %v271_v7  ;;  %s163_s25 = sld [smem:[#allocation2 + $0xa]]  ;;  %p221_p9 = pnand %p220_p8, %p214_p5 }
  0x1e   :  { %v277_v13 = vstv %s162_s1  ;;  %v77_v26 = vadd.f32 %v76_v19, %v75_v18  ;;  %v104_v45 = vmul.f32 %v94_v41, %v271_v7  ;;  %v97_v46 = vadd.f32 %v96_v43, %v95_v42  ;;  %s164_s26 = sld [smem:[#allocation2 + $0xb]] }
  0x1f   :  { %v70_v11 = vadd.f32 %v69_v9, %v68_v8  ;;  %v66_v14 = vadd.f32 %v65_v10, %v275_v12  ;;  %v52_v22 = vstv %s157_s21  ;;  %v85_v27 = vadd.f32 %v84_v21, %v83_v20  ;;  %s165_s27 = sld [smem:[#allocation2 + $0xc]] }
  0x20   :  { %v53_v24 = vstv %s158_s22  ;;  %v105_v47 = vadd.f32 %v104_v45, %v103_v44  ;;  %v115_v62 = vmul.f32 %v113_v60, %v263_v2  ;;  %v116_v63 = vmul.f32 %v114_v61, %v265_v3 }
  0x21   :  { %v71_v15 = vadd.f32 %v70_v11, %v277_v13  ;;  %169 = vtanh.f32 %v66_v14  ;;  %v54_v23 = vstv %s159_s23  ;;  %v123_v0 = vmul.f32 %v113_v60, %v268_v5 }
  0x22   :  { %v55_v25 = vstv %s160_s24  ;;  %v124_v1 = vmul.f32 %v114_v61, %v271_v7  ;;  %v117_v4 = vadd.f32 %v116_v63, %v115_v62 }
  0x23   :  { %171 = vtanh.f32 %v71_v15  ;;  %v58_v5 = vstv %s163_s25 }
  0x24   :  { %v125_v6 = vadd.f32 %v124_v1, %v123_v0  ;;  %v59_v7 = vstv %s164_s26 }
  0x2e   :  { %v170_v28 = vpop.eup %169 }
  0x2f   :  { %v78_v30 = vmul.f32 %v170_v28, %v52_v22  ;;  %v86_v31 = vmul.f32 %v170_v28, %v54_v23 }
  0x30   :  { %v172_v29 = vpop.eup %171 }
  0x31   :  { %v80_v32 = vmul.f32 %v172_v29, %v53_v24  ;;  %v88_v33 = vmul.f32 %v172_v29, %v55_v25  ;;  %v79_v34 = vadd.f32 %v78_v30, %v77_v26  ;;  %v87_v35 = vadd.f32 %v86_v31, %v85_v27 }
  0x33   :  { %v81_v36 = vadd.f32 %v80_v32, %v79_v34  ;;  %v89_v37 = vadd.f32 %v88_v33, %v87_v35 }
  0x35   :  { %v82_v38 = vadd.f32 %v81_v36, %v275_v12  ;;  %v90_v39 = vadd.f32 %v89_v37, %v277_v13 }
  0x37   :  { %173 = vtanh.f32 %v82_v38 }
  0x38   :  { %175 = vtanh.f32 %v90_v39 }
  0x44   :  { %v174_v48 = vpop.eup %173 }
  0x45   :  { %v176_v49 = vpop.eup %175  ;;  %v98_v50 = vmul.f32 %v174_v48, %v52_v22  ;;  %v106_v51 = vmul.f32 %v174_v48, %v54_v23 }
  0x46   :  { %v100_v52 = vmul.f32 %v176_v49, %v53_v24  ;;  %v108_v53 = vmul.f32 %v176_v49, %v55_v25 }
  0x47   :  { %v99_v54 = vadd.f32 %v98_v50, %v97_v46  ;;  %v107_v55 = vadd.f32 %v106_v51, %v105_v47 }
  0x49   :  { %v101_v56 = vadd.f32 %v100_v52, %v99_v54  ;;  %v109_v57 = vadd.f32 %v108_v53, %v107_v55 }
  0x4b   :  { %v102_v58 = vadd.f32 %v101_v56, %v275_v12  ;;  %v110_v59 = vadd.f32 %v109_v57, %v277_v13 }
  0x4d   :  { %177 = vtanh.f32 %v102_v58 }
  0x4e   :  { %179 = vtanh.f32 %v110_v59 }
  0x5a   :  { %v178_v8 = vpop.eup %177 }
  0x5b   :  { %v180_v9 = vpop.eup %179  ;;  %v118_v10 = vmul.f32 %v178_v8, %v52_v22  ;;  %v126_v11 = vmul.f32 %v178_v8, %v54_v23 }
  0x5c   :  { %v120_v14 = vmul.f32 %v180_v9, %v53_v24  ;;  %v128_v15 = vmul.f32 %v180_v9, %v55_v25  ;;  %v60_v24 = vstv %s165_s27 }
  0x5d   :  { %v119_v16 = vadd.f32 %v118_v10, %v117_v4  ;;  %v127_v17 = vadd.f32 %v126_v11, %v125_v6 }
  0x5f   :  { %v121_v18 = vadd.f32 %v120_v14, %v119_v16  ;;  %v129_v19 = vadd.f32 %v128_v15, %v127_v17 }
  0x61   :  { %v122_v2 = vadd.f32 %v121_v18, %v275_v12  ;;  %v130_v3 = vadd.f32 %v129_v19, %v277_v13 }
  0x63   :  { %181 = vtanh.f32 %v122_v2 }
  0x64   :  { %183 = vtanh.f32 %v130_v3 }
  0x70   :  { %v182_v20 = vpop.eup %181 }
  0x71   :  { %v184_v21 = vpop.eup %183  ;;  %v133_v22 = vmul.f32 %v182_v20, %v58_v5 }
  0x72   :  { %v134_v23 = vmul.f32 %v184_v21, %v59_v7 }
  0x74   :  { %v135_v25 = vadd.f32 %v134_v23, %v133_v22 }
  0x76   :  { %v136_v26 = vadd.f32 %v135_v25, %v60_v24 }
  0x78   :  { %137 = vst [vmem:[#allocation7] sm:$0x1] %v136_v26 }
  0x79   :  { %224 = shalt.err (!%p221_p9)
}
  0x7a   :  { %147 = dma.vmem_to_hbm [thread:$0]  %s145_s29, 16, %s304_s2, [#allocation4]  }
  0x7b   :  { %237 = dma.done.wait [#allocation4], 16  }
  0x7c   :  { %238 = vsyncadd [#allocation4], 4294967280 }
  0x7d   :  { %151 = vsyncpa [#allocation3], 1 }
  0x7e   :  { %152 = vsyncpa [#allocation4], 1 }
  0x7f   :  { %153 = vsyncpa [#allocation5], 1 }

</bundles_post_ra>
